<compile_context>
chip_gen: v6e
topology: v6e:2x2x1
jax: 0.10.0
libtpu: 0.0.40
codegen_flags: <defaults>
</compile_context>

<pallas_src>
import functools

import jax
import jax.numpy as jnp
import numpy as np
from jax.experimental import pallas as pl
from jax.experimental.pallas import tpu as pltpu

EPS = 1e-5
LANE = 128


def _round_up(x, m):
    return (x + m - 1) // m * m


# ----------------------------------------------------------------------------
# Pallas kernel: one row tile, all layers in-kernel, weights VMEM-resident.
# ----------------------------------------------------------------------------
def _backbone_kernel(ids_ref, emb_ref, g_ref, w_in_ref, wout_ref, gf_ref, out_ref,
                     *, d_model, d_inner_pad, n_layer, vocab):
    # Embedding lookup as (one-hot @ E) on the MXU; one-hot built in VMEM.
    ids = ids_ref[...]                                              # (TM, 1) i32
    tm = ids.shape[0]
    iota = jax.lax.broadcasted_iota(jnp.int32, (tm, vocab), 1)
    onehot = (iota == ids).astype(jnp.bfloat16)                     # (TM, V)
    x = jnp.dot(onehot, emb_ref[...],
                preferred_element_type=jnp.float32)                 # (TM, Dp) f32

    inv_d = jnp.float32(1.0 / d_model)

    def layer_body(l, x):
        # RMSNorm (padded channels are exactly zero, so sum / d_model is exact).
        var = jnp.sum(x * x, axis=-1, keepdims=True) * inv_d
        xn = (x * jax.lax.rsqrt(var + EPS) * g_ref[l]).astype(jnp.bfloat16)
        # Fused in_proj: one 256-wide matmul (fills the v6e/v7x MXU output width).
        xz = jnp.dot(xn, w_in_ref[l], preferred_element_type=jnp.float32)  # (TM, 2*Ip)
        x1 = xz[:, :d_inner_pad]                                    # lane-tile aligned split
        z = xz[:, d_inner_pad:]
        y = (x1 * (z * jax.nn.sigmoid(z))).astype(jnp.bfloat16)     # SiLU gate
        return x + jnp.dot(y, wout_ref[l], preferred_element_type=jnp.float32)

    if n_layer <= 8:
        # Fully unrolled with static weight indices (LLO scheduler visibility).
        for l in range(n_layer):
            x = layer_body(l, x)
    else:
        x = jax.lax.fori_loop(0, n_layer, layer_body, x)

    # Final RMSNorm, store only the logical d_model channels (unpadded output).
    var = jnp.sum(x * x, axis=-1, keepdims=True) * inv_d
    y = x * jax.lax.rsqrt(var + EPS) * gf_ref[...]
    out_ref[...] = y[:, :d_model]


def caduceus_backbone_pallas(input_ids, padded, *, d_model, n_layer, row_tile=1024):
    """Runs the synthetic Caduceus backbone.  input_ids: (...,) int32 -> (..., D) f32."""
    vocab, Dp = padded["emb"].shape
    Ip2 = padded["w_in"].shape[2]
    Ip = Ip2 // 2
    batch_shape = input_ids.shape
    N = int(np.prod(batch_shape))

    # Token-row tiling (backbone is per-token, so B and L fold into one axis).
    if N <= row_tile:
        TM = _round_up(N, 8)
    elif N < 2 * row_tile:
        TM = _round_up((N + 1) // 2, 8)   # keep >= 2 tiles so both v7x TCs get work
    else:
        TM = row_tile
    Np = _round_up(N, TM)

    ids = jnp.reshape(input_ids, (N, 1)).astype(jnp.int32)
    if Np != N:
        ids = jnp.pad(ids, ((0, Np - N), (0, 0)))

    flops = 2 * Np * vocab * Dp + 2 * Np * n_layer * (Dp * Ip2 + Ip * Dp)
    bytes_accessed = (
        Np * 4                                           # ids in
        + 2 * (padded["emb"].size + padded["w_in"].size  # bf16 weights, fetched once
               + padded["wout"].size)
        + 4 * (padded["g"].size + padded["gf"].size)     # f32 gammas
        + Np * d_model * 4)                              # unpadded f32 output
    cost = pl.CostEstimate(flops=flops,
                           transcendentals=Np * (n_layer * Ip + n_layer + 1),
                           bytes_accessed=bytes_accessed)

    kernel = functools.partial(_backbone_kernel, d_model=d_model,
                               d_inner_pad=Ip, n_layer=n_layer, vocab=vocab)

    out = pl.pallas_call(
        kernel,
        out_shape=jax.ShapeDtypeStruct((Np, d_model), jnp.float32),
        grid=(Np // TM,),
        in_specs=[
            pl.BlockSpec((TM, 1), lambda i: (i, 0)),               # token ids (tiled)
            pl.BlockSpec((vocab, Dp), lambda i: (0, 0)),           # embedding (resident)
            pl.BlockSpec((n_layer, 1, Dp), lambda i: (0, 0, 0)),   # rmsnorm gammas (resident)
            pl.BlockSpec((n_layer, Dp, Ip2), lambda i: (0, 0, 0)),  # fused W_in (resident)
            pl.BlockSpec((n_layer, Ip, Dp), lambda i: (0, 0, 0)),  # W_out (resident)
            pl.BlockSpec((1, Dp), lambda i: (0, 0)),               # final gamma (resident)
        ],
        out_specs=pl.BlockSpec((TM, d_model), lambda i: (i, 0)),
        compiler_params=pltpu.CompilerParams(dimension_semantics=("parallel",)),
        cost_estimate=cost,
    )(ids, padded["emb"], padded["g"], padded["w_in"], padded["wout"], padded["gf"])

    if Np != N:
        out = out[:N]
    return out.reshape(*batch_shape, d_model)


# Pure-JAX reference of the same synthetic backbone (same bf16 matmul path).
def caduceus_backbone_ref(input_ids, params):
    emb = params["emb"].astype(jnp.float32)
    x = emb[input_ids]
    n_layer = params["g"].shape[0]
    for l in range(n_layer):
        var = jnp.mean(x * x, axis=-1, keepdims=True)
        xn = (x * jax.lax.rsqrt(var + EPS) * params["g"][l]).astype(jnp.bfloat16)
        x1 = jnp.dot(xn, params["w1"][l], preferred_element_type=jnp.float32)
        z = jnp.dot(xn, params["wz"][l], preferred_element_type=jnp.float32)
        y = (x1 * (z * jax.nn.sigmoid(z))).astype(jnp.bfloat16)
        x = x + jnp.dot(y, params["wout"][l], preferred_element_type=jnp.float32)
    var = jnp.mean(x * x, axis=-1, keepdims=True)
    return x * jax.lax.rsqrt(var + EPS) * params["gf"]


# ----------------------------------------------------------------------------
# Module wrapper: mirrors DNAEmbeddingModelHFCaduceus.forward exactly.
# ----------------------------------------------------------------------------
class DNAEmbeddingModelHFCaduceusPallas:
    def __init__(self, d_model=32, n_layer=2, d_inner=64, vocab_size=16,
                 rcps=False, conjoin_train=False, conjoin_test=False,
                 training=False, seed=0):
        self.d_model = d_model
        self.n_layer = n_layer
        self.d_inner = d_inner
        self.vocab_size = vocab_size
        self.rcps = rcps
        self.conjoin_train = conjoin_train
        self.conjoin_test = conjoin_test
        self.training = training

        key = jax.random.PRNGKey(seed)
        k_emb, k1, kz, k_out = jax.random.split(key, 4)
        # Logical (unpadded) parameters; matmul operands stored as bf16.
        emb = (0.05 * jax.random.normal(k_emb, (vocab_size, d_model))).astype(jnp.bfloat16)
        w1 = (0.05 * jax.random.normal(k1, (n_layer, d_model, d_inner))).astype(jnp.bfloat16)
        wz = (0.05 * jax.random.normal(kz, (n_layer, d_model, d_inner))).astype(jnp.bfloat16)
        wout = (0.05 * jax.random.normal(k_out, (n_layer, d_inner, d_model))).astype(jnp.bfloat16)
        g = jnp.ones((n_layer, 1, d_model), jnp.float32)
        gf = jnp.ones((1, d_model), jnp.float32)
        self.params = {"emb": emb, "w1": w1, "wz": wz, "wout": wout, "g": g, "gf": gf}

        # Zero-padded copies at lane-aligned channel sizes (padding stays exactly
        # zero through the whole network).  Vocab is NOT padded (K = vocab_size).
        Dp = _round_up(d_model, LANE)
        Ip = _round_up(d_inner, LANE)
        w1p = jnp.pad(w1, ((0, 0), (0, Dp - d_model), (0, Ip - d_inner)))
        wzp = jnp.pad(wz, ((0, 0), (0, Dp - d_model), (0, Ip - d_inner)))
        self.padded_params = {
            "emb": jnp.pad(emb, ((0, 0), (0, Dp - d_model))),
            "w_in": jnp.concatenate([w1p, wzp], axis=-1),          # (n_layer, Dp, 2*Ip)
            "wout": jnp.pad(wout, ((0, 0), (0, Ip - d_inner), (0, Dp - d_model))),
            "g": jnp.pad(g, ((0, 0), (0, 0), (0, Dp - d_model))),
            "gf": jnp.pad(gf, ((0, 0), (0, Dp - d_model))),
        }

    def _backbone(self, input_ids):
        return caduceus_backbone_pallas(
            input_ids, self.padded_params,
            d_model=self.d_model, n_layer=self.n_layer)

    def forward(self, input_ids, position_ids=None, inference_params=None, state=None):
        """Caduceus backbone-specific forward pass that does not use `position_ids`."""
        if self.rcps:
            hidden_states = self._backbone(input_ids)                 # (B, L, C)
            num_chan = hidden_states.shape[-1]
            # TODO(synk): the channel-split + flip could be folded into the kernel
            #             store via a reversed output index_map if rcps is hot.
            return (jnp.stack(
                [hidden_states[..., :num_chan // 2],
                 jnp.flip(hidden_states[..., num_chan // 2:], axis=(1, 2))],
                axis=-1), None)
        if self.conjoin_train or (self.conjoin_test and (not self.training)):
            assert input_ids.ndim == 3, \
                "Input must be 3D tensor, where channels corresponds to forward and rc strands"
            # Single kernel launch for both strands (batch-concatenated).
            B = input_ids.shape[0]
            both = jnp.concatenate([input_ids[..., 0], input_ids[..., 1]], axis=0)
            h = self._backbone(both)                                  # (2B, L, C)
            return (jnp.stack([h[:B], h[B:]], axis=-1), None)
        return (self._backbone(input_ids), None)

    __call__ = forward

    @property
    def d_output(self):
        return self.d_model


if __name__ == "__main__":
    B, L = 2, 8
    VOCAB, D_MODEL, N_LAYER, D_INNER = 16, 32, 2, 64

    key = jax.random.PRNGKey(0)
    ids = jax.random.randint(key, (B, L), 0, VOCAB, dtype=jnp.int32)

    # --- default path (no rcps, no conjoin) ---
    model = DNAEmbeddingModelHFCaduceusPallas(
        d_model=D_MODEL, n_layer=N_LAYER, d_inner=D_INNER, vocab_size=VOCAB)
    hidden, _ = model(ids)
    hidden = jax.block_until_ready(hidden)
    assert hidden.shape == (B, L, D_MODEL)

    # correctness vs. pure-JAX reference
    ref = caduceus_backbone_ref(ids, model.params)
    np.testing.assert_allclose(np.asarray(hidden), np.asarray(ref),
                               rtol=2e-2, atol=2e-2)

    # --- rcps path (channel split + flip over seq & channel + stack) ---
    model_rcps = DNAEmbeddingModelHFCaduceusPallas(
        d_model=D_MODEL, n_layer=N_LAYER, d_inner=D_INNER, vocab_size=VOCAB, rcps=True)
    h_rcps, _ = model_rcps(ids)
    h_rcps = jax.block_until_ready(h_rcps)
    assert h_rcps.shape == (B, L, D_MODEL // 2, 2)

    # --- conjoin path (3D input: forward / reverse-complement strands) ---
    ids3 = jnp.stack([ids, ids[:, ::-1]], axis=-1)  # (B, L, 2)
    model_cj = DNAEmbeddingModelHFCaduceusPallas(
        d_model=D_MODEL, n_layer=N_LAYER, d_inner=D_INNER, vocab_size=VOCAB,
        conjoin_train=True)
    h_cj, _ = model_cj(ids3)
    h_cj = jax.block_until_ready(h_cj)
    assert h_cj.shape == (B, L, D_MODEL, 2)

    # conjoin result must equal running each strand independently
    ref_fwd = caduceus_backbone_ref(ids, model_cj.params)
    ref_rc = caduceus_backbone_ref(ids[:, ::-1], model_cj.params)
    np.testing.assert_allclose(np.asarray(h_cj[..., 0]), np.asarray(ref_fwd),
                               rtol=2e-2, atol=2e-2)
    np.testing.assert_allclose(np.asarray(h_cj[..., 1]), np.asarray(ref_rc),
                               rtol=2e-2, atol=2e-2)

    print("KERNEL_OK")
</pallas_src>

<mosaic_0001>
module attributes {stable_mosaic.version = 11 : i64} {
  func.func @_backbone_kernel(%arg0: i32, %arg1: memref<16x1xi32, #tpu.memory_space<vmem>>, %arg2: memref<16x128xbf16, #tpu.memory_space<vmem>>, %arg3: memref<2x1x128xf32, #tpu.memory_space<vmem>>, %arg4: memref<2x128x256xbf16, #tpu.memory_space<vmem>>, %arg5: memref<2x128x128xbf16, #tpu.memory_space<vmem>>, %arg6: memref<1x128xf32, #tpu.memory_space<vmem>>, %arg7: memref<16x32xf32, #tpu.memory_space<vmem>>) attributes {dimension_semantics = [#tpu.dimension_semantics<parallel>], iteration_bounds = array<i64: 1>, scalar_prefetch = 0 : i64, scratch_operands = 0 : i64, tpu.core_type = #tpu.core_type<tc>, window_params = [{transform_indices = @transform_0, window_bounds = array<i64: 16, 1>}, {pipeline_mode = #tpu.pipeline_mode<synchronous>, transform_indices = @transform_1, window_bounds = array<i64: 16, 128>}, {pipeline_mode = #tpu.pipeline_mode<synchronous>, transform_indices = @transform_2, window_bounds = array<i64: 2, 1, 128>}, {pipeline_mode = #tpu.pipeline_mode<synchronous>, transform_indices = @transform_3, window_bounds = array<i64: 2, 128, 256>}, {pipeline_mode = #tpu.pipeline_mode<synchronous>, transform_indices = @transform_4, window_bounds = array<i64: 2, 128, 128>}, {pipeline_mode = #tpu.pipeline_mode<synchronous>, transform_indices = @transform_5, window_bounds = array<i64: 1, 128>}, {transform_indices = @transform_6, window_bounds = array<i64: 16, 32>}]} {
    %c0 = arith.constant 0 : index
    %c0_0 = arith.constant 0 : index
    %0 = vector.load %arg1[%c0, %c0_0] : memref<16x1xi32, #tpu.memory_space<vmem>>, vector<16x1xi32>
    %1 = tpu.iota {dimensions = array<i32: 1>} : vector<16x16xi32>
    %2 = vector.broadcast %0 : vector<16x1xi32> to vector<16x16xi32>
    %3 = arith.cmpi eq, %1, %2 : vector<16x16xi32>
    %4 = arith.extui %3 : vector<16x16xi1> to vector<16x16xi32>
    %5 = arith.sitofp %4 : vector<16x16xi32> to vector<16x16xf32>
    %6 = arith.truncf %5 : vector<16x16xf32> to vector<16x16xbf16>
    %c0_1 = arith.constant 0 : index
    %c0_2 = arith.constant 0 : index
    %7 = vector.load %arg2[%c0_1, %c0_2] : memref<16x128xbf16, #tpu.memory_space<vmem>>, vector<16x128xbf16>
    %cst = arith.constant dense<0.000000e+00> : vector<16x128xf32>
    %8 = tpu.matmul %6, %7, %cst {dimension_numbers = #tpu.dot_dimension_numbers<[1], [0], [0], [1], [0, 0, 1, 1], [], []>} : vector<16x16xbf16>, vector<16x128xbf16>, vector<16x128xf32> -> vector<16x128xf32>
    %9 = arith.mulf %8, %8 : vector<16x128xf32>
    %cst_3 = arith.constant dense<0.000000e+00> : vector<16xf32>
    %10 = vector.multi_reduction <add>, %9, %cst_3 [1] : vector<16x128xf32> to vector<16xf32>
    %11 = vector.shape_cast %10 : vector<16xf32> to vector<16x1xf32>
    %cst_4 = arith.constant 3.125000e-02 : f32
    %12 = vector.broadcast %cst_4 : f32 to vector<16x1xf32>
    %13 = arith.mulf %11, %12 : vector<16x1xf32>
    %cst_5 = arith.constant 9.99999974E-6 : f32
    %14 = vector.broadcast %cst_5 : f32 to vector<16x1xf32>
    %15 = arith.addf %13, %14 : vector<16x1xf32>
    %16 = math.rsqrt %15 : vector<16x1xf32>
    %17 = vector.broadcast %16 : vector<16x1xf32> to vector<16x128xf32>
    %18 = arith.mulf %8, %17 : vector<16x128xf32>
    %c0_6 = arith.constant 0 : index
    %c0_7 = arith.constant 0 : index
    %c0_8 = arith.constant 0 : index
    %19 = vector.load %arg3[%c0_6, %c0_7, %c0_8] : memref<2x1x128xf32, #tpu.memory_space<vmem>>, vector<1x1x128xf32>
    %20 = vector.shape_cast %19 : vector<1x1x128xf32> to vector<1x128xf32>
    %21 = vector.broadcast %20 : vector<1x128xf32> to vector<16x128xf32>
    %22 = arith.mulf %18, %21 : vector<16x128xf32>
    %23 = arith.truncf %22 : vector<16x128xf32> to vector<16x128xbf16>
    %c0_9 = arith.constant 0 : index
    %c0_10 = arith.constant 0 : index
    %c0_11 = arith.constant 0 : index
    %24 = vector.load %arg4[%c0_9, %c0_10, %c0_11] : memref<2x128x256xbf16, #tpu.memory_space<vmem>>, vector<1x128x256xbf16>
    %25 = vector.shape_cast %24 : vector<1x128x256xbf16> to vector<128x256xbf16>
    %cst_12 = arith.constant dense<0.000000e+00> : vector<16x256xf32>
    %26 = tpu.matmul %23, %25, %cst_12 {dimension_numbers = #tpu.dot_dimension_numbers<[1], [0], [0], [1], [0, 0, 1, 1], [], []>} : vector<16x128xbf16>, vector<128x256xbf16>, vector<16x256xf32> -> vector<16x256xf32>
    %27 = vector.extract_strided_slice %26 {offsets = [0, 0], sizes = [16, 128], strides = [1, 1]} : vector<16x256xf32> to vector<16x128xf32>
    %28 = vector.extract_strided_slice %26 {offsets = [0, 128], sizes = [16, 128], strides = [1, 1]} : vector<16x256xf32> to vector<16x128xf32>
    %29 = arith.negf %28 : vector<16x128xf32>
    %30 = math.exp %29 : vector<16x128xf32>
    %cst_13 = arith.constant 1.000000e+00 : f32
    %31 = vector.broadcast %cst_13 : f32 to vector<16x128xf32>
    %32 = arith.addf %31, %30 : vector<16x128xf32>
    %33 = arith.divf %31, %32 : vector<16x128xf32>
    %34 = arith.mulf %28, %33 : vector<16x128xf32>
    %35 = arith.mulf %27, %34 : vector<16x128xf32>
    %36 = arith.truncf %35 : vector<16x128xf32> to vector<16x128xbf16>
    %c0_14 = arith.constant 0 : index
    %c0_15 = arith.constant 0 : index
    %c0_16 = arith.constant 0 : index
    %37 = vector.load %arg5[%c0_14, %c0_15, %c0_16] : memref<2x128x128xbf16, #tpu.memory_space<vmem>>, vector<1x128x128xbf16>
    %38 = vector.shape_cast %37 : vector<1x128x128xbf16> to vector<128x128xbf16>
    %cst_17 = arith.constant dense<0.000000e+00> : vector<16x128xf32>
    %39 = tpu.matmul %36, %38, %cst_17 {dimension_numbers = #tpu.dot_dimension_numbers<[1], [0], [0], [1], [0, 0, 1, 1], [], []>} : vector<16x128xbf16>, vector<128x128xbf16>, vector<16x128xf32> -> vector<16x128xf32>
    %40 = arith.addf %8, %39 : vector<16x128xf32>
    %41 = arith.mulf %40, %40 : vector<16x128xf32>
    %cst_18 = arith.constant dense<0.000000e+00> : vector<16xf32>
    %42 = vector.multi_reduction <add>, %41, %cst_18 [1] : vector<16x128xf32> to vector<16xf32>
    %43 = vector.shape_cast %42 : vector<16xf32> to vector<16x1xf32>
    %cst_19 = arith.constant 3.125000e-02 : f32
    %44 = vector.broadcast %cst_19 : f32 to vector<16x1xf32>
    %45 = arith.mulf %43, %44 : vector<16x1xf32>
    %cst_20 = arith.constant 9.99999974E-6 : f32
    %46 = vector.broadcast %cst_20 : f32 to vector<16x1xf32>
    %47 = arith.addf %45, %46 : vector<16x1xf32>
    %48 = math.rsqrt %47 : vector<16x1xf32>
    %49 = vector.broadcast %48 : vector<16x1xf32> to vector<16x128xf32>
    %50 = arith.mulf %40, %49 : vector<16x128xf32>
    %c1 = arith.constant 1 : index
    %c0_21 = arith.constant 0 : index
    %c0_22 = arith.constant 0 : index
    %51 = vector.load %arg3[%c1, %c0_21, %c0_22] : memref<2x1x128xf32, #tpu.memory_space<vmem>>, vector<1x1x128xf32>
    %52 = vector.shape_cast %51 : vector<1x1x128xf32> to vector<1x128xf32>
    %53 = vector.broadcast %52 : vector<1x128xf32> to vector<16x128xf32>
    %54 = arith.mulf %50, %53 : vector<16x128xf32>
    %55 = arith.truncf %54 : vector<16x128xf32> to vector<16x128xbf16>
    %c1_23 = arith.constant 1 : index
    %c0_24 = arith.constant 0 : index
    %c0_25 = arith.constant 0 : index
    %56 = vector.load %arg4[%c1_23, %c0_24, %c0_25] : memref<2x128x256xbf16, #tpu.memory_space<vmem>>, vector<1x128x256xbf16>
    %57 = vector.shape_cast %56 : vector<1x128x256xbf16> to vector<128x256xbf16>
    %cst_26 = arith.constant dense<0.000000e+00> : vector<16x256xf32>
    %58 = tpu.matmul %55, %57, %cst_26 {dimension_numbers = #tpu.dot_dimension_numbers<[1], [0], [0], [1], [0, 0, 1, 1], [], []>} : vector<16x128xbf16>, vector<128x256xbf16>, vector<16x256xf32> -> vector<16x256xf32>
    %59 = vector.extract_strided_slice %58 {offsets = [0, 0], sizes = [16, 128], strides = [1, 1]} : vector<16x256xf32> to vector<16x128xf32>
    %60 = vector.extract_strided_slice %58 {offsets = [0, 128], sizes = [16, 128], strides = [1, 1]} : vector<16x256xf32> to vector<16x128xf32>
    %61 = arith.negf %60 : vector<16x128xf32>
    %62 = math.exp %61 : vector<16x128xf32>
    %cst_27 = arith.constant 1.000000e+00 : f32
    %63 = vector.broadcast %cst_27 : f32 to vector<16x128xf32>
    %64 = arith.addf %63, %62 : vector<16x128xf32>
    %65 = arith.divf %63, %64 : vector<16x128xf32>
    %66 = arith.mulf %60, %65 : vector<16x128xf32>
    %67 = arith.mulf %59, %66 : vector<16x128xf32>
    %68 = arith.truncf %67 : vector<16x128xf32> to vector<16x128xbf16>
    %c1_28 = arith.constant 1 : index
    %c0_29 = arith.constant 0 : index
    %c0_30 = arith.constant 0 : index
    %69 = vector.load %arg5[%c1_28, %c0_29, %c0_30] : memref<2x128x128xbf16, #tpu.memory_space<vmem>>, vector<1x128x128xbf16>
    %70 = vector.shape_cast %69 : vector<1x128x128xbf16> to vector<128x128xbf16>
    %cst_31 = arith.constant dense<0.000000e+00> : vector<16x128xf32>
    %71 = tpu.matmul %68, %70, %cst_31 {dimension_numbers = #tpu.dot_dimension_numbers<[1], [0], [0], [1], [0, 0, 1, 1], [], []>} : vector<16x128xbf16>, vector<128x128xbf16>, vector<16x128xf32> -> vector<16x128xf32>
    %72 = arith.addf %40, %71 : vector<16x128xf32>
    %73 = arith.mulf %72, %72 : vector<16x128xf32>
    %cst_32 = arith.constant dense<0.000000e+00> : vector<16xf32>
    %74 = vector.multi_reduction <add>, %73, %cst_32 [1] : vector<16x128xf32> to vector<16xf32>
    %75 = vector.shape_cast %74 : vector<16xf32> to vector<16x1xf32>
    %cst_33 = arith.constant 3.125000e-02 : f32
    %76 = vector.broadcast %cst_33 : f32 to vector<16x1xf32>
    %77 = arith.mulf %75, %76 : vector<16x1xf32>
    %cst_34 = arith.constant 9.99999974E-6 : f32
    %78 = vector.broadcast %cst_34 : f32 to vector<16x1xf32>
    %79 = arith.addf %77, %78 : vector<16x1xf32>
    %80 = math.rsqrt %79 : vector<16x1xf32>
    %81 = vector.broadcast %80 : vector<16x1xf32> to vector<16x128xf32>
    %82 = arith.mulf %72, %81 : vector<16x128xf32>
    %c0_35 = arith.constant 0 : index
    %c0_36 = arith.constant 0 : index
    %83 = vector.load %arg6[%c0_35, %c0_36] : memref<1x128xf32, #tpu.memory_space<vmem>>, vector<1x128xf32>
    %84 = vector.broadcast %83 : vector<1x128xf32> to vector<16x128xf32>
    %85 = arith.mulf %82, %84 : vector<16x128xf32>
    %86 = vector.extract_strided_slice %85 {offsets = [0, 0], sizes = [16, 32], strides = [1, 1]} : vector<16x128xf32> to vector<16x32xf32>
    %c0_37 = arith.constant 0 : index
    %c0_38 = arith.constant 0 : index
    %87 = vector.load %arg7[%c0_37, %c0_38] : memref<16x32xf32, #tpu.memory_space<vmem>>, vector<16x32xf32>
    tpu.vector_store %arg7[%c0_37, %c0_38], %86 {strides = array<i32>} : memref<16x32xf32, #tpu.memory_space<vmem>>, vector<16x32xf32>,
    return
  }
  func.func @transform_0(%arg0: i32) -> (i32, i32) {
    %c0_i32 = arith.constant 0 : i32
    %c0_i32_0 = arith.constant 0 : i32
    return %arg0, %c0_i32 : i32, i32
  }
  func.func @transform_1(%arg0: i32) -> (i32, i32) {
    %c0_i32 = arith.constant 0 : i32
    %c0_i32_0 = arith.constant 0 : i32
    %c0_i32_1 = arith.constant 0 : i32
    return %c0_i32, %c0_i32_0 : i32, i32
  }
  func.func @transform_2(%arg0: i32) -> (i32, i32, i32) {
    %c0_i32 = arith.constant 0 : i32
    %c0_i32_0 = arith.constant 0 : i32
    %c0_i32_1 = arith.constant 0 : i32
    %c0_i32_2 = arith.constant 0 : i32
    return %c0_i32, %c0_i32_0, %c0_i32_1 : i32, i32, i32
  }
  func.func @transform_3(%arg0: i32) -> (i32, i32, i32) {
    %c0_i32 = arith.constant 0 : i32
    %c0_i32_0 = arith.constant 0 : i32
    %c0_i32_1 = arith.constant 0 : i32
    %c0_i32_2 = arith.constant 0 : i32
    return %c0_i32, %c0_i32_0, %c0_i32_1 : i32, i32, i32
  }
  func.func @transform_4(%arg0: i32) -> (i32, i32, i32) {
    %c0_i32 = arith.constant 0 : i32
    %c0_i32_0 = arith.constant 0 : i32
    %c0_i32_1 = arith.constant 0 : i32
    %c0_i32_2 = arith.constant 0 : i32
    return %c0_i32, %c0_i32_0, %c0_i32_1 : i32, i32, i32
  }
  func.func @transform_5(%arg0: i32) -> (i32, i32) {
    %c0_i32 = arith.constant 0 : i32
    %c0_i32_0 = arith.constant 0 : i32
    %c0_i32_1 = arith.constant 0 : i32
    return %c0_i32, %c0_i32_0 : i32, i32
  }
  func.func @transform_6(%arg0: i32) -> (i32, i32) {
    %c0_i32 = arith.constant 0 : i32
    %c0_i32_0 = arith.constant 0 : i32
    return %arg0, %c0_i32 : i32, i32
  }
}

</mosaic_0001>

<bundles_post_ra>
// kernel: tpu_custom_call.1
= control target key start
LH: loop header
LB: loop body
LE: loop exit
PB: predicated region body
PF: predicated region fallthrough
CT: control target
= control target key end

     0   :  { %11 = vsyncpa [#allocation3], 0  ;;  %s1170_s0 = inlined_call_operand.vmem [shape: s32[16,1], index: 0, kind: input, shape index: {}]   ;;  %s1171_s1 = inlined_call_operand.vmem [shape: bf16[16,128], index: 1, kind: input, shape index: {}]   ;;  %s1172_s2 = inlined_call_operand.vmem [shape: f32[2,1,128], index: 2, kind: input, shape index: {}]   ;;  %s1173_s3 = inlined_call_operand.hbm [shape: bf16[2,128,256], index: 3, kind: input, shape index: {}]   ;;  %s1174_s4 = inlined_call_operand.hbm [shape: bf16[2,128,128], index: 4, kind: input, shape index: {}]   ;;  %s1175_s5 = inlined_call_operand.vmem [shape: f32[1,128], index: 5, kind: input, shape index: {}]   ;;  %s1176_s6 = inlined_call_operand.hbm [shape: f32[16,32], index: 6, kind: output, shape index: {}]  }
   0x1   :  { %12 = vsyncpa [#allocation6], 0 }
   0x2   :  { %13 = vsyncpa [#allocation4], 0  ;;  %s1040_s21 = smov [#allocation2]  }
   0x3   :  { %s25_s22 = sshll.u32 %s1040_s21, 4  ;;  %s26_s22 = int_to_ptr.vmem [resolvable:$true] %s25_s22 }
   0x4   :  { %s982_s23 = scalar_lea.vmem %s26_s22, 4096  ;;  %p987_p1 = scmp.lt.s32.totalorder %s26_s22, %s26_s22 }
   0x5   :  { %p983_p0 = scmp.ne.s32.totalorder %s26_s22, %s982_s23  ;;  %p988_p2 = scmp.lt.s32.totalorder %s982_s23, %s982_s23 }
   0x7   :  { %p989_p3 = por %p988_p2, %p987_p1 }
   0x9   :  { %p990_p4 = pnand %p989_p3, %p983_p0 }
   0xb   :  { %993 = shalt.err (!%p990_p4)
}
   0xc   :  { %s1041_s24 = smov 128   ;;  %s1042_s25 = smov 8  }
   0xd   :  { %31 = dma.hbm_to_vmem [thread:$0]  %s1173_s3, 4096, %s26_s22, [#allocation3], %s1041_s24, %s1041_s24, %s1042_s25  }
   0xe   :  { %s1043_s28 = smov [#allocation5]  }
   0xf   :  { %s37_s29 = sshll.u32 %s1043_s28, 4  ;;  %s38_s29 = int_to_ptr.vmem [resolvable:$true] %s37_s29 }
  0x10   :  { %s1002_s30 = scalar_lea.vmem %s38_s29, 2048  ;;  %p1007_p6 = scmp.lt.s32.totalorder %s38_s29, %s38_s29 }
  0x11   :  { %p1003_p5 = scmp.ne.s32.totalorder %s38_s29, %s1002_s30  ;;  %p1008_p7 = scmp.lt.s32.totalorder %s1002_s30, %s1002_s30 }
  0x13   :  { %p1009_p8 = por %p1008_p7, %p1007_p6 }
  0x15   :  { %p1010_p9 = pnand %p1009_p8, %p1003_p5 }
  0x17   :  { %1013 = shalt.err (!%p1010_p9)
}
  0x18   :  { %s1044_s7 = smov 64   ;;  %s1045_s8 = smov 4  }
  0x19   :  { %43 = dma.hbm_to_vmem [thread:$0]  %s1174_s4, 2048, %s38_s29, [#allocation6], %s1044_s7, %s1044_s7, %s1045_s8  }
  0x1a   :  { %1034 = dma.done.wait [#allocation3], 4096  }
  0x1b   :  { %1035 = vsyncadd [#allocation3], 4294963200 }
  0x1c   :  { %1036 = dma.done.wait [#allocation6], 2048  }
  0x1d   :  { %1037 = vsyncadd [#allocation6], 4294965248  ;;  %v1046_v0 = vmov 0   ;;  %v1047_v1 = vmov 0.0   ;;  %v53_v2 = vld [vmem:[%s1170_s0] sm:$0xff]  ;;  %v54_v3 = vld [vmem:[%s1170_s0 + $0x8] sm:$0xff]  ;;  %v55_v5 = vlaneseq }
  0x1e   :  { %880 = vset.pattern.permute.xlu0 %v1046_v0  ;;  %824 = vmatprep.subr.bf16.mxu0 %v1047_v1  ;;  %v881_v4 = vld [vmem:[%s1171_s1] sm:$0xff]   ;;  %vm1048_vm0 = vmmov 0   ;;  %vm78_vm3 = vcmask 130048   ;;  %v882_v12 = vld [vmem:[#allocation2 + $0x74] ss:$8 sps:$4 sm:$0xff]   ;;  %v908_v50 = vld [vmem:[#allocation5 + $0x28] sm:$0xff]  }
  0x1f   :  { %275 = vmatprep.mubr.bf16.mxu1 %v1046_v0  ;;  %58 = vperm.xlu0 %880, %v53_v2   ;;  %v56_v6 = vand.u32 127, %v55_v5  ;;  %v884_v13 = vld [vmem:[#allocation2 + $0x70] ss:$8 sps:$4 sm:$0xff]   ;;  %v885_v20 = vld [vmem:[#allocation2 + $0x64] ss:$8 sps:$4 sm:$0xff]   ;;  %vm723_vm4 = vcmask 261120  }
  0x20   :  { %825 = vmatpush3.bf16.msra.mxu0 %v881_v4  ;;  %826 = vmatprep.mubr.msk.bf16.mxu0 %vm1048_vm0, %v1047_v1  ;;  %v887_v21 = vld [vmem:[#allocation2 + $0x60] ss:$8 sps:$4 sm:$0xff]   ;;  %v888_v22 = vld [vmem:[#allocation2 + $0x54] ss:$8 sps:$4 sm:$0xff]   ;;  %v890_v23 = vld [vmem:[#allocation2 + $0x50] ss:$8 sps:$4 sm:$0xff]  }
  0x21   :  { %830 = vmatprep.subr.bf16.mxu0 %v1047_v1  ;;  %243 = vmatprep.subr.bf16.mxu1 %v882_v12  ;;  %v891_v24 = vld [vmem:[#allocation2 + $0x44] ss:$8 sps:$4 sm:$0xff]   ;;  %v893_v25 = vld [vmem:[#allocation2 + $0x40] ss:$8 sps:$4 sm:$0xff]   ;;  %v894_v26 = vld [vmem:[#allocation2 + $0x34] ss:$8 sps:$4 sm:$0xff]  }
  0x22   :  { %244 = vmatpush1.bf16.msra.mxu1 %v884_v13  ;;  %v896_v27 = vld [vmem:[#allocation2 + $0x30] ss:$8 sps:$4 sm:$0xff]   ;;  %v897_v28 = vld [vmem:[#allocation2 + $0x24] ss:$8 sps:$4 sm:$0xff]   ;;  %v899_v29 = vld [vmem:[#allocation2 + $0x20] ss:$8 sps:$4 sm:$0xff]  }
  0x23   :  { %61 = vperm.xlu0 %880, %v54_v3   ;;  %245 = vmatprep.subr.bf16.mxu1 %v885_v20  ;;  %v900_v30 = vld [vmem:[#allocation2 + $0x14] ss:$8 sps:$4 sm:$0xff]   ;;  %v902_v31 = vld [vmem:[#allocation2 + $0x10] ss:$8 sps:$4 sm:$0xff]   ;;  %v903_v32 = vld [vmem:[#allocation2 + $0x4] ss:$8 sps:$4 sm:$0xff]  }
  0x24   :  { %v905_v33 = vld [vmem:[#allocation2] ss:$8 sps:$4 sm:$0xff]   ;;  %v906_v48 = vld [vmem:[#allocation5 + $0x38] sm:$0xff]   ;;  %v907_v49 = vld [vmem:[#allocation5 + $0x30] sm:$0xff]   ;;  %s1049_s18 = smov [#allocation7]  }
  0x25   :  { %v748_v43 = vld [vmem:[%s1172_s2] ss:$0 sm:$0xff]  ;;  %v910_v52 = vld [vmem:[#allocation5 + $0x18] sm:$0xff]   ;;  %v911_v53 = vld [vmem:[#allocation5 + $0x10] sm:$0xff]   ;;  %s731_s19 = sshll.u32 %s1049_s18, 4  ;;  %s732_s19 = int_to_ptr.vmem [resolvable:$true] %s731_s19 }
  0x26   :  { %246 = vmatpush1.bf16.msra.mxu1 %v887_v21  ;;  %v909_v51 = vld [vmem:[#allocation5 + $0x20] sm:$0xff]   ;;  %v912_v54 = vld [vmem:[#allocation5 + $0x8] sm:$0xff]   ;;  %s1014_s20 = scalar_lea.vmem %s732_s19, 256  ;;  %p1019_p11 = scmp.lt.s32.totalorder %s732_s19, %s732_s19 }
  0x27   :  { %247 = vmatprep.subr.bf16.mxu1 %v888_v22  ;;  %v913_v55 = vld [vmem:[#allocation5] sm:$0xff]   ;;  %p1015_p10 = scmp.ne.s32.totalorder %s732_s19, %s1014_s20  ;;  %p1020_p12 = scmp.lt.s32.totalorder %s1014_s20, %s1014_s20 }
  0x28   :  { %v919_v22 = vld [vmem:[#allocation2 + $0xe4] ss:$8 sps:$4 sm:$0xff]  }
  0x29   :  { %p1021_p13 = por %p1020_p12, %p1019_p11 }
  0x2a   :  { %248 = vmatpush1.bf16.msra.mxu1 %v890_v23  ;;  %v917_v23 = vld [vmem:[#allocation2 + $0xe0] ss:$8 sps:$4 sm:$0xff]  }
  0x2b   :  { %249 = vmatprep.subr.bf16.mxu1 %v891_v24  ;;  %v920_v24 = vld [vmem:[#allocation2 + $0xd0] ss:$8 sps:$4 sm:$0xff]   ;;  %p1022_p0 = pnand %p1021_p13, %p1015_p10 }
  0x2e   :  { %250 = vmatpush1.bf16.msra.mxu1 %v893_v25  ;;  %v925_v25 = vld [vmem:[#allocation2 + $0xc4] ss:$8 sps:$4 sm:$0xff]  }
  0x2f   :  { %251 = vmatprep.subr.bf16.mxu1 %v894_v26  ;;  %v923_v26 = vld [vmem:[#allocation2 + $0xc0] ss:$8 sps:$4 sm:$0xff]  }
  0x32   :  { %252 = vmatpush1.bf16.msra.mxu1 %v896_v27  ;;  %v928_v27 = vld [vmem:[#allocation2 + $0xb4] ss:$8 sps:$4 sm:$0xff]  }
  0x33   :  { %253 = vmatprep.subr.bf16.mxu1 %v897_v28  ;;  %v931_v28 = vld [vmem:[#allocation2 + $0xa4] ss:$8 sps:$4 sm:$0xff]  }
  0x36   :  { %254 = vmatpush1.bf16.msra.mxu1 %v899_v29  ;;  %v929_v29 = vld [vmem:[#allocation2 + $0xa0] ss:$8 sps:$4 sm:$0xff]  }
  0x37   :  { %255 = vmatprep.subr.bf16.mxu1 %v900_v30  ;;  %v934_v30 = vld [vmem:[#allocation2 + $0x94] ss:$8 sps:$4 sm:$0xff]  }
  0x3a   :  { %256 = vmatpush1.bf16.msra.mxu1 %v902_v31  ;;  %v932_v31 = vld [vmem:[#allocation2 + $0x90] ss:$8 sps:$4 sm:$0xff]  }
  0x3b   :  { %257 = vmatprep.subr.bf16.mxu1 %v903_v32  ;;  %v937_v32 = vld [vmem:[#allocation2 + $0x84] ss:$8 sps:$4 sm:$0xff]  }
  0x3e   :  { %258 = vmatpush1.bf16.msra.mxu1 %v905_v33  ;;  %v935_v33 = vld [vmem:[#allocation2 + $0x80] ss:$8 sps:$4 sm:$0xff]  }
  0x9a   :  { %v59_v7 = vpop.permute.xlu0 %58 }
  0x9b   :  { %vm63_vm1 = vcmp.eq.s32.totalorder %v56_v6, %v59_v7 }
  0x9c   :  { %v744_v9 = vsel %vm63_vm1, 1.0, %v1047_v1 }
  0x9e   :  { %v62_v8 = vpop.permute.xlu0 %61 }
  0x9f   :  { %vm64_vm2 = vcmp.eq.s32.totalorder %v56_v6, %v62_v8 }
  0xa0   :  { %v745_v10 = vsel %vm64_vm2, 1.0, %v1047_v1 }
  0xa1   :  { %v69_v11 = vpack.c.bf16 %v745_v10, %v744_v9  ;;  %v914_v10 = vld [vmem:[#allocation2 + $0xf0] ss:$8 sps:$4 sm:$0xff]  }
  0xa3   :  { %827 = vmatmul.mubr.msk.bf16.vlgmr.msra.gmra.mxu0 %vm78_vm3, %v69_v11  ;;  %v916_v11 = vld [vmem:[#allocation2 + $0xf4] ss:$8 sps:$4 sm:$0xff]  }
  0xa4   :  { %846 = vmatprep.mubr.msk.bf16.mxu0 %vm1048_vm0, %v1047_v1  ;;  %831 = vmatpush3.bf16.msra.mxu0 %v906_v48  ;;  %v938_v48 = vld [vmem:[#allocation5 + $0x78] sm:$0xff]  }
  0xa5   :  { %832 = vmatprep.subr.bf16.mxu0 %v1047_v1  ;;  %532 = vmatprep.subr.bf16.mxu1 %v916_v11 }
  0xa8   :  { %833 = vmatpush3.bf16.msra.mxu0 %v907_v49  ;;  %v939_v49 = vld [vmem:[#allocation5 + $0x70] sm:$0xff]  }
  0xa9   :  { %834 = vmatprep.subr.bf16.mxu0 %v1047_v1 }
  0xac   :  { %835 = vmatpush3.bf16.msra.mxu0 %v908_v50  ;;  %v940_v50 = vld [vmem:[#allocation5 + $0x68] sm:$0xff]  }
  0xad   :  { %836 = vmatprep.subr.bf16.mxu0 %v1047_v1 }
  0xb0   :  { %837 = vmatpush3.bf16.msra.mxu0 %v909_v51  ;;  %v941_v51 = vld [vmem:[#allocation5 + $0x60] sm:$0xff]  }
  0xb1   :  { %838 = vmatprep.subr.bf16.mxu0 %v1047_v1 }
  0xb4   :  { %839 = vmatpush3.bf16.msra.mxu0 %v910_v52  ;;  %v942_v52 = vld [vmem:[#allocation5 + $0x58] sm:$0xff]  }
  0xb5   :  { %840 = vmatprep.subr.bf16.mxu0 %v1047_v1 }
  0xb8   :  { %841 = vmatpush3.bf16.msra.mxu0 %v911_v53  ;;  %v943_v53 = vld [vmem:[#allocation5 + $0x50] sm:$0xff]  }
  0xb9   :  { %842 = vmatprep.subr.bf16.mxu0 %v1047_v1 }
  0xbc   :  { %843 = vmatpush3.bf16.msra.mxu0 %v912_v54  ;;  %v944_v54 = vld [vmem:[#allocation5 + $0x48] sm:$0xff]  }
  0xbd   :  { %844 = vmatprep.subr.bf16.mxu0 %v1047_v1 }
  0xc0   :  { %845 = vmatpush3.bf16.msra.mxu0 %v913_v55  ;;  %v945_v55 = vld [vmem:[#allocation5 + $0x40] sm:$0xff]  }
  0xc1   :  { %850 = vmatprep.subr.bf16.mxu0 %v1047_v1 }
 0x163   :  { %v1113_v14 = vpop.f32.mrf.mxu0 }
 0x164   :  { %v123_v15 = vmul.f32 %v1113_v14, %v1113_v14 }
 0x165   :  { %v828_v16 = vpop.f32.mrf.mxu0 }
 0x166   :  { %125 = vadd.xlane.f32.xlu1 %v123_v15 }
 0x167   :  { %v1117_v17 = vpop.f32.mrf.mxu0 }
 0x168   :  { %v124_v18 = vmul.f32 %v1117_v17, %v1117_v17 }
 0x169   :  { %v829_v19 = vpop.f32.mrf.mxu0 }
 0x16a   :  { %127 = vadd.xlane.f32.xlu1 %v124_v18 }
 0x1ef   :  { %v126_v34 = vpop.xlane.xlu1 %125 }
 0x1f0   :  { %v129_v35 = vmul.f32 0.03125, %v126_v34 }
 0x1f2   :  { %v131_v36 = vadd.f32 1e-05, %v129_v35 }
 0x1f3   :  { %v128_v37 = vpop.xlane.xlu1 %127 }
 0x1f4   :  { %946 = vrsqrt.f32 %v131_v36  ;;  %v130_v38 = vmul.f32 0.03125, %v128_v37 }
 0x1f6   :  { %v132_v39 = vadd.f32 1e-05, %v130_v38 }
 0x1f8   :  { %948 = vrsqrt.f32 %v132_v39 }
 0x201   :  { %v947_v40 = vpop.eup %946 }
 0x202   :  { %v135_v41 = vmul.f32 %v947_v40, %v1113_v14 }
 0x204   :  { %v144_v45 = vmul.f32 %v748_v43, %v135_v41 }
 0x205   :  { %v949_v42 = vpop.eup %948 }
 0x206   :  { %v136_v44 = vmul.f32 %v949_v42, %v1117_v17 }
 0x208   :  { %v145_v46 = vmul.f32 %v748_v43, %v136_v44  ;;  %v776_v43 = vld [vmem:[%s1172_s2 + $0x1] ss:$0 sm:$0xff] }
 0x20a   :  { %v146_v47 = vpack.c.bf16 %v145_v46, %v144_v45 }
 0x20c   :  { %276 = vmatmul.mubr.bf16.vlgmr.msra.gmra.mxu1 %v146_v47 }
 0x20d   :  { %564 = vmatprep.mubr.bf16.mxu1 %v1046_v0  ;;  %533 = vmatpush1.bf16.msra.mxu1 %v914_v10 }
 0x20e   :  { %534 = vmatprep.subr.bf16.mxu1 %v919_v22 }
 0x211   :  { %535 = vmatpush1.bf16.msra.mxu1 %v917_v23 }
 0x2cc   :  { %v277_v56 = vpop.f32.mrf.mxu1 }
 0x2ce   :  { %v279_v57 = vpop.f32.mrf.mxu1 }
 0x2cf   :  { %v765_v58 = vmul.f32 -1.442695, %v279_v57 }
 0x2d0   :  { %v281_v59 = vpop.f32.mrf.mxu1 }
 0x2d1   :  { %950 = vpow2.f32 %v765_v58 }
 0x2d2   :  { %v283_v60 = vpop.f32.mrf.mxu1 }
 0x2d3   :  { %v766_v61 = vmul.f32 -1.442695, %v283_v60 }
 0x2d5   :  { %952 = vpow2.f32 %v766_v61 }
 0x2de   :  { %v951_v62 = vpop.eup %950 }
 0x2df   :  { %v292_v63 = vadd.f32 1.0, %v951_v62 }
 0x2e1   :  { %954 = vrcp.f32 %v292_v63 }
 0x2e2   :  { %v953_v0 = vpop.eup %952 }
 0x2e3   :  { %v293_v2 = vadd.f32 1.0, %v953_v0 }
 0x2e5   :  { %956 = vrcp.f32 %v293_v2 }
 0x2ee   :  { %v955_v3 = vpop.eup %954 }
 0x2ef   :  { %v298_v4 = vmul.f32 %v955_v3, %v279_v57 }
 0x2f1   :  { %v300_v7 = vmul.f32 %v298_v4, %v277_v56 }
 0x2f2   :  { %v957_v5 = vpop.eup %956 }
 0x2f3   :  { %v299_v6 = vmul.f32 %v957_v5, %v283_v60 }
 0x2f5   :  { %v301_v8 = vmul.f32 %v299_v6, %v281_v59 }
 0x2f7   :  { %v302_v9 = vpack.c.bf16 %v301_v8, %v300_v7 }
 0x2f9   :  { %847 = vmatmul.mubr.bf16.vlgmr.msra.gmra.mxu0 %v302_v9 }
 0x2fa   :  { %866 = vmatprep.mubr.msk.bf16.mxu0 %vm1048_vm0, %v1047_v1  ;;  %851 = vmatpush3.bf16.msra.mxu0 %v938_v48 }
 0x2fb   :  { %852 = vmatprep.subr.bf16.mxu0 %v1047_v1 }
 0x2fe   :  { %853 = vmatpush3.bf16.msra.mxu0 %v939_v49 }
 0x2ff   :  { %854 = vmatprep.subr.bf16.mxu0 %v1047_v1 }
 0x302   :  { %855 = vmatpush3.bf16.msra.mxu0 %v940_v50 }
 0x303   :  { %856 = vmatprep.subr.bf16.mxu0 %v1047_v1 }
 0x306   :  { %857 = vmatpush3.bf16.msra.mxu0 %v941_v51 }
 0x307   :  { %858 = vmatprep.subr.bf16.mxu0 %v1047_v1 }
 0x30a   :  { %859 = vmatpush3.bf16.msra.mxu0 %v942_v52 }
 0x30b   :  { %860 = vmatprep.subr.bf16.mxu0 %v1047_v1 }
 0x30e   :  { %861 = vmatpush3.bf16.msra.mxu0 %v943_v53 }
 0x30f   :  { %862 = vmatprep.subr.bf16.mxu0 %v1047_v1 }
 0x312   :  { %863 = vmatpush3.bf16.msra.mxu0 %v944_v54 }
 0x313   :  { %864 = vmatprep.subr.bf16.mxu0 %v1047_v1 }
 0x316   :  { %865 = vmatpush3.bf16.msra.mxu0 %v945_v55 }
 0x3b9   :  { %v401_v12 = vpop.f32.mrf.mxu0 }
 0x3ba   :  { %v1138_v13 = vadd.f32 %v401_v12, %v1113_v14  ;;  %v922_v14 = vld [vmem:[#allocation2 + $0xd4] ss:$8 sps:$4 sm:$0xff]  }
 0x3bb   :  { %v848_v15 = vpop.f32.mrf.mxu0  ;;  %536 = vmatprep.subr.bf16.mxu1 %v922_v14 }
 0x3bc   :  { %v410_v16 = vmul.f32 %v1138_v13, %v1138_v13  ;;  %537 = vmatpush1.bf16.msra.mxu1 %v920_v24 }
 0x3bd   :  { %v404_v18 = vpop.f32.mrf.mxu0  ;;  %538 = vmatprep.subr.bf16.mxu1 %v925_v25 }
 0x3be   :  { %v1143_v19 = vadd.f32 %v404_v18, %v1117_v17  ;;  %412 = vadd.xlane.f32.xlu0 %v410_v16  ;;  %v926_v17 = vld [vmem:[#allocation2 + $0xb0] ss:$8 sps:$4 sm:$0xff]  }
 0x3bf   :  { %v849_v20 = vpop.f32.mrf.mxu0 }
 0x3c0   :  { %v411_v21 = vmul.f32 %v1143_v19, %v1143_v19  ;;  %539 = vmatpush1.bf16.msra.mxu1 %v923_v26 }
 0x3c1   :  { %540 = vmatprep.subr.bf16.mxu1 %v928_v27 }
 0x3c2   :  { %414 = vadd.xlane.f32.xlu1 %v411_v21 }
 0x3c4   :  { %541 = vmatpush1.bf16.msra.mxu1 %v926_v17 }
 0x3c5   :  { %542 = vmatprep.subr.bf16.mxu1 %v931_v28 }
 0x3c8   :  { %543 = vmatpush1.bf16.msra.mxu1 %v929_v29 }
 0x3c9   :  { %544 = vmatprep.subr.bf16.mxu1 %v934_v30 }
 0x3cc   :  { %545 = vmatpush1.bf16.msra.mxu1 %v932_v31 }
 0x3cd   :  { %546 = vmatprep.subr.bf16.mxu1 %v937_v32 }
 0x3d0   :  { %547 = vmatpush1.bf16.msra.mxu1 %v935_v33 }
 0x447   :  { %v413_v34 = vpop.xlane.xlu0 %412 }
 0x448   :  { %v416_v35 = vmul.f32 0.03125, %v413_v34 }
 0x44a   :  { %v418_v36 = vadd.f32 1e-05, %v416_v35 }
 0x44b   :  { %v415_v37 = vpop.xlane.xlu1 %414 }
 0x44c   :  { %958 = vrsqrt.f32 %v418_v36  ;;  %v417_v38 = vmul.f32 0.03125, %v415_v37 }
 0x44e   :  { %v419_v39 = vadd.f32 1e-05, %v417_v38 }
 0x450   :  { %960 = vrsqrt.f32 %v419_v39 }
 0x459   :  { %v959_v40 = vpop.eup %958 }
 0x45a   :  { %v422_v41 = vmul.f32 %v959_v40, %v1138_v13 }
 0x45c   :  { %v432_v45 = vmul.f32 %v776_v43, %v422_v41 }
 0x45d   :  { %v961_v42 = vpop.eup %960 }
 0x45e   :  { %v423_v44 = vmul.f32 %v961_v42, %v1143_v19 }
 0x460   :  { %v433_v46 = vmul.f32 %v776_v43, %v423_v44 }
 0x462   :  { %v434_v47 = vpack.c.bf16 %v433_v46, %v432_v45 }
 0x464   :  { %565 = vmatmul.mubr.bf16.vlgmr.msra.gmra.mxu1 %v434_v47 }
 0x524   :  { %v566_v56 = vpop.f32.mrf.mxu1 }
 0x526   :  { %v568_v57 = vpop.f32.mrf.mxu1 }
 0x527   :  { %v793_v58 = vmul.f32 -1.442695, %v568_v57 }
 0x528   :  { %v570_v59 = vpop.f32.mrf.mxu1 }
 0x529   :  { %962 = vpow2.f32 %v793_v58 }
 0x52a   :  { %v572_v60 = vpop.f32.mrf.mxu1 }
 0x52b   :  { %v794_v61 = vmul.f32 -1.442695, %v572_v60 }
 0x52d   :  { %964 = vpow2.f32 %v794_v61 }
 0x536   :  { %v963_v62 = vpop.eup %962 }
 0x537   :  { %v581_v63 = vadd.f32 1.0, %v963_v62 }
 0x539   :  { %966 = vrcp.f32 %v581_v63 }
 0x53a   :  { %v965_v0 = vpop.eup %964 }
 0x53b   :  { %v582_v2 = vadd.f32 1.0, %v965_v0 }
 0x53d   :  { %968 = vrcp.f32 %v582_v2 }
 0x546   :  { %v967_v3 = vpop.eup %966 }
 0x547   :  { %v587_v4 = vmul.f32 %v967_v3, %v568_v57 }
 0x549   :  { %v589_v6 = vmul.f32 %v587_v4, %v566_v56 }
 0x54a   :  { %v969_v5 = vpop.eup %968 }
 0x54b   :  { %v588_v1 = vmul.f32 %v969_v5, %v572_v60 }
 0x54d   :  { %v590_v7 = vmul.f32 %v588_v1, %v570_v59 }
 0x54f   :  { %v591_v8 = vpack.c.bf16 %v590_v7, %v589_v6 }
 0x551   :  { %867 = vmatmul.mubr.bf16.vlgmr.msra.gmra.mxu0 %v591_v8 }
 0x611   :  { %v691_v9 = vpop.f32.mrf.mxu0 }
 0x612   :  { %v698_v10 = vadd.f32 %v691_v9, %v1138_v13  ;;  %v803_v13 = vld [vmem:[%s1175_s5] ss:$0 sm:$0xff] }
 0x613   :  { %v868_v11 = vpop.f32.mrf.mxu0 }
 0x614   :  { %v700_v12 = vmul.f32 %v698_v10, %v698_v10 }
 0x615   :  { %v694_v15 = vpop.f32.mrf.mxu0 }
 0x616   :  { %v699_v16 = vadd.f32 %v694_v15, %v1143_v19  ;;  %702 = vadd.xlane.f32.xlu1 %v700_v12 }
 0x617   :  { %v869_v18 = vpop.f32.mrf.mxu0 }
 0x618   :  { %v701_v20 = vmul.f32 %v699_v16, %v699_v16 }
 0x61a   :  { %704 = vadd.xlane.f32.xlu1 %v701_v20 }
 0x69f   :  { %v703_v21 = vpop.xlane.xlu1 %702 }
 0x6a0   :  { %v706_v22 = vmul.f32 0.03125, %v703_v21 }
 0x6a2   :  { %v708_v23 = vadd.f32 1e-05, %v706_v22 }
 0x6a3   :  { %v705_v14 = vpop.xlane.xlu1 %704 }
 0x6a4   :  { %970 = vrsqrt.f32 %v708_v23  ;;  %v707_v24 = vmul.f32 0.03125, %v705_v14 }
 0x6a6   :  { %v709_v25 = vadd.f32 1e-05, %v707_v24 }
 0x6a8   :  { %972 = vrsqrt.f32 %v709_v25 }
 0x6b1   :  { %v971_v26 = vpop.eup %970 }
 0x6b2   :  { %v712_v27 = vmul.f32 %v971_v26, %v698_v10 }
 0x6b4   :  { %v721_v19 = vmul.f32 %v803_v13, %v712_v27 }
 0x6b5   :  { %v973_v17 = vpop.eup %972 }
 0x6b6   :  { %v713_v28 = vmul.f32 %v973_v17, %v699_v16  ;;  %724 = vst.msk [vmem:[#allocation7] sm:$0xff] %vm723_vm4, %v721_v19 }
 0x6b8   :  { %v722_v29 = vmul.f32 %v803_v13, %v713_v28 }
 0x6ba   :  { %725 = vst.msk [vmem:[#allocation7 + $0x8] sm:$0xff] %vm723_vm4, %v722_v29 }
 0x6bb   :  { %1025 = shalt.err (!%p1022_p0)
}
 0x6bc   :  { %737 = dma.vmem_to_hbm [thread:$0]  %s732_s19, 256, %s1176_s6, [#allocation4], %s1041_s24, %s1041_s24, %s1042_s25  }
 0x6bd   :  { %1038 = dma.done.wait [#allocation4], 256  }
 0x6be   :  { %1039 = vsyncadd [#allocation4], 4294967040 }
 0x6bf   :  { %741 = vsyncpa [#allocation3], 1 }
 0x6c0   :  { %742 = vsyncpa [#allocation6], 1 }
 0x6c1   :  { %743 = vsyncpa [#allocation4], 1 }

</bundles_post_ra>
